<compile_context>
chip_gen: v6e
topology: v6e:2x2x1
jax: 0.10.0
libtpu: 0.0.40
codegen_flags: <defaults>
</compile_context>

<pallas_src>
import math

import jax
import jax.numpy as jnp
from jax.experimental import pallas as pl
from jax.experimental.pallas import tpu as pltpu

LANE = 128


def _round_up(x, m):
    return ((x + m - 1) // m) * m


# ----------------------------------------------------------------------------
# Kernel 1: fused feature projection  S = x @ [W | W_loop]
# ----------------------------------------------------------------------------
def _proj_kernel(x_ref, w_ref, s_ref):
    s_ref[...] = jnp.dot(x_ref[...], w_ref[...],
                         preferred_element_type=jnp.float32)


# ----------------------------------------------------------------------------
# Kernel 2: tiled aggregation  out = adj @ S_support + S_loop + bias
#   grid = (i, k), k is the contraction axis (last), accumulator in VMEM.
# ----------------------------------------------------------------------------
def _agg_kernel(adj_ref, ssup_ref, sloop_ref, b_ref, o_ref, acc_ref):
    k = pl.program_id(1)

    @pl.when(k == 0)
    def _():
        acc_ref[...] = jnp.zeros_like(acc_ref)

    acc_ref[...] += jnp.dot(adj_ref[...], ssup_ref[...],
                            preferred_element_type=jnp.float32)

    @pl.when(k == pl.num_programs(1) - 1)
    def _():
        # Add self-loop projection and bias exactly once, at finalize.
        o_ref[...] = (acc_ref[...] + sloop_ref[...] + b_ref[...]).astype(o_ref.dtype)


# ----------------------------------------------------------------------------
# Wrapper
# ----------------------------------------------------------------------------
@jax.jit
def gconv_forward(x, adj, weight, loop_weight, bias):
    # torch.squeeze(adj_mat) intent: drop a leading batch dim of 1 (guarded so
    # we never over-squeeze a genuine size-1 node axis).
    if adj.ndim == 3 and adj.shape[0] == 1:
        adj = adj[0]
    assert adj.ndim == 2, "adjacency must be (N, N) after squeezing"

    x = x.astype(jnp.float32)
    adj = adj.astype(jnp.float32)
    weight = weight.astype(jnp.float32)
    loop_weight = loop_weight.astype(jnp.float32)
    bias = bias.astype(jnp.float32)

    n, f_in = x.shape
    f_out = weight.shape[1]

    # Lane-dense output width (F_out padded to a multiple of 128).
    f_out_pad = _round_up(f_out, LANE)

    # Tile size for the adjacency stream / output rows. Multiple of 128 (so the
    # (8,128) block constraint holds) and capped at 512 so the double-buffered
    # working set fits every generation's scoped VMEM.
    t = min(512, _round_up(n, LANE))
    n_pad = _round_up(n, t)

    # Zero-padded inputs (zero rows/cols contribute nothing to the matmuls).
    x_p = jnp.zeros((n_pad, f_in), jnp.float32).at[:n, :].set(x)
    adj_p = jnp.zeros((n_pad, n_pad), jnp.float32).at[:n, :n].set(adj)

    # Fused + lane-padded weight: columns [0, f_out_pad) hold W, columns
    # [f_out_pad, 2*f_out_pad) hold W_loop (each zero-padded to f_out_pad).
    w_cat = jnp.zeros((f_in, 2 * f_out_pad), jnp.float32)
    w_cat = w_cat.at[:, :f_out].set(weight)
    w_cat = w_cat.at[:, f_out_pad:f_out_pad + f_out].set(loop_weight)

    b_pad = jnp.zeros((1, f_out_pad), jnp.float32).at[0, :f_out].set(bias)

    # ---------------- projection: S = x @ [W | W_loop], computed once --------
    s = pl.pallas_call(
        _proj_kernel,
        out_shape=jax.ShapeDtypeStruct((n_pad, 2 * f_out_pad), jnp.float32),
        grid=(n_pad // t,),
        in_specs=[
            pl.BlockSpec((t, f_in), lambda p: (p, 0)),              # x rows
            pl.BlockSpec((f_in, 2 * f_out_pad), lambda p: (0, 0)),  # resident weights
        ],
        out_specs=pl.BlockSpec((t, 2 * f_out_pad), lambda p: (p, 0)),
        compiler_params=pltpu.CompilerParams(
            dimension_semantics=("parallel",),
            vmem_limit_bytes=64 << 20,
        ),
    )(x_p, w_cat)

    # ---------------- aggregation: adj @ S_support + S_loop + bias -----------
    kt = n_pad // t
    flops = 2 * n_pad * n_pad * f_out_pad
    bytes_accessed = 4 * (
        n_pad * n_pad                 # adj stream
        + kt * n_pad * f_out_pad      # support tiles re-read per row-tile
        + n_pad * f_out_pad           # loop tiles
        + n_pad * f_out_pad           # output
        + f_out_pad                   # bias
    )

    out_p = pl.pallas_call(
        _agg_kernel,
        out_shape=jax.ShapeDtypeStruct((n_pad, f_out_pad), jnp.float32),
        grid=(kt, kt),
        in_specs=[
            pl.BlockSpec((t, t), lambda i, k: (i, k)),            # adj tile
            pl.BlockSpec((t, f_out_pad), lambda i, k: (k, 0)),    # S support half
            pl.BlockSpec((t, f_out_pad), lambda i, k: (i, 1)),    # S loop half
            pl.BlockSpec((1, f_out_pad), lambda i, k: (0, 0)),    # bias (resident)
        ],
        out_specs=pl.BlockSpec((t, f_out_pad), lambda i, k: (i, 0)),
        scratch_shapes=[pltpu.VMEM((t, f_out_pad), jnp.float32)],
        compiler_params=pltpu.CompilerParams(
            dimension_semantics=("parallel", "arbitrary"),
            vmem_limit_bytes=64 << 20,
        ),
        cost_estimate=pl.CostEstimate(
            flops=flops, transcendentals=0, bytes_accessed=bytes_accessed),
    )(adj_p, s, s, b_pad)

    return out_p[:n, :f_out]


# ----------------------------------------------------------------------------
# Helpers / reference
# ----------------------------------------------------------------------------
def xavier_uniform(key, shape):
    fan_in, fan_out = shape
    bound = math.sqrt(6.0 / (fan_in + fan_out))
    return jax.random.uniform(key, shape, jnp.float32, -bound, bound)


def reference(x, adj, weight, loop_weight, bias):
    if adj.ndim == 3 and adj.shape[0] == 1:
        adj = adj[0]
    support = x @ weight
    support_loop = x @ loop_weight
    return adj @ support + support_loop + bias


# ----------------------------------------------------------------------------
# Test
# ----------------------------------------------------------------------------
if __name__ == "__main__":
    key = jax.random.PRNGKey(0)

    # Small case (matches the module's typical toy shapes).
    k_x, k_adj, k_w, k_wl = jax.random.split(key, 4)
    N, F_IN, F_OUT = 8, 16, 32
    x = jax.random.normal(k_x, (N, F_IN), jnp.float32)
    adj = jax.random.uniform(k_adj, (1, N, N), jnp.float32)  # leading dim squeezed
    weight = xavier_uniform(k_w, (F_IN, F_OUT))
    loop_weight = xavier_uniform(k_wl, (F_IN, F_OUT))
    bias = jnp.zeros((F_OUT,), jnp.float32)

    out = jax.block_until_ready(gconv_forward(x, adj, weight, loop_weight, bias))
    ref = reference(x, adj, weight, loop_weight, bias)
    assert out.shape == (N, F_OUT)
    assert jnp.allclose(out, ref, atol=1e-4, rtol=1e-4), "small-case mismatch"

    # Larger case that exercises the multi-tile (i, k) grid and the reduction
    # accumulator path (N padded to 1024, grid = (2, 2)).
    k2 = jax.random.PRNGKey(1)
    k_x2, k_adj2, k_w2, k_wl2 = jax.random.split(k2, 4)
    N2, F_IN2, F_OUT2 = 640, 48, 96
    x2 = jax.random.normal(k_x2, (N2, F_IN2), jnp.float32)
    adj2 = jax.random.uniform(k_adj2, (1, N2, N2), jnp.float32)
    w2 = xavier_uniform(k_w2, (F_IN2, F_OUT2))
    wl2 = xavier_uniform(k_wl2, (F_IN2, F_OUT2))
    b2 = jax.random.normal(jax.random.PRNGKey(2), (F_OUT2,), jnp.float32) * 0.1

    out2 = jax.block_until_ready(gconv_forward(x2, adj2, w2, wl2, b2))
    ref2 = reference(x2, adj2, w2, wl2, b2)
    assert out2.shape == (N2, F_OUT2)
    assert jnp.allclose(out2, ref2, atol=1e-2, rtol=1e-3), "large-case mismatch"

    print("KERNEL_OK")
</pallas_src>

<mosaic_0001>
module attributes {stable_mosaic.version = 11 : i64} {
  func.func @_agg_kernel(%arg0: i32, %arg1: i32, %arg2: memref<128x128xf32, #tpu.memory_space<vmem>>, %arg3: memref<128x128xf32, #tpu.memory_space<vmem>>, %arg4: memref<128x128xf32, #tpu.memory_space<vmem>>, %arg5: memref<1x128xf32, #tpu.memory_space<vmem>>, %arg6: memref<128x128xf32, #tpu.memory_space<vmem>>, %arg7: memref<128x128xf32, #tpu.memory_space<vmem>>) attributes {dimension_semantics = [#tpu.dimension_semantics<parallel>, #tpu.dimension_semantics<arbitrary>], iteration_bounds = array<i64: 1, 1>, scalar_prefetch = 0 : i64, scratch_operands = 1 : i64, tpu.core_type = #tpu.core_type<tc>, window_params = [{transform_indices = @transform_0, window_bounds = array<i64: 128, 128>}, {transform_indices = @transform_1, window_bounds = array<i64: 128, 128>}, {transform_indices = @transform_2, window_bounds = array<i64: 128, 128>}, {pipeline_mode = #tpu.pipeline_mode<synchronous>, transform_indices = @transform_3, window_bounds = array<i64: 1, 128>}, {transform_indices = @transform_4, window_bounds = array<i64: 128, 128>}]} {
    %c0_i32 = arith.constant 0 : i32
    %0 = arith.cmpi eq, %arg1, %c0_i32 : i32
    %1 = arith.extui %0 : i1 to i32
    %c0_i32_0 = arith.constant 0 : i32
    %2 = arith.cmpi ne, %1, %c0_i32_0 : i32
    scf.if %2 {
      %cst_10 = arith.constant 0.000000e+00 : f32
      %12 = vector.broadcast %cst_10 : f32 to vector<128x128xf32>
      %c0_11 = arith.constant 0 : index
      %c0_12 = arith.constant 0 : index
      %13 = vector.load %arg7[%c0_11, %c0_12] : memref<128x128xf32, #tpu.memory_space<vmem>>, vector<128x128xf32>
      tpu.vector_store %arg7[%c0_11, %c0_12], %12 {strides = array<i32>} : memref<128x128xf32, #tpu.memory_space<vmem>>, vector<128x128xf32>,
    } else {
    }
    %c0 = arith.constant 0 : index
    %c0_1 = arith.constant 0 : index
    %3 = vector.load %arg7[%c0, %c0_1] : memref<128x128xf32, #tpu.memory_space<vmem>>, vector<128x128xf32>
    %c0_2 = arith.constant 0 : index
    %c0_3 = arith.constant 0 : index
    %4 = vector.load %arg2[%c0_2, %c0_3] : memref<128x128xf32, #tpu.memory_space<vmem>>, vector<128x128xf32>
    %c0_4 = arith.constant 0 : index
    %c0_5 = arith.constant 0 : index
    %5 = vector.load %arg3[%c0_4, %c0_5] : memref<128x128xf32, #tpu.memory_space<vmem>>, vector<128x128xf32>
    %cst = arith.constant dense<0.000000e+00> : vector<128x128xf32>
    %6 = tpu.matmul %4, %5, %cst {dimension_numbers = #tpu.dot_dimension_numbers<[1], [0], [0], [1], [0, 0, 1, 1], [], []>} : vector<128x128xf32>, vector<128x128xf32>, vector<128x128xf32> -> vector<128x128xf32>
    %7 = arith.addf %3, %6 : vector<128x128xf32>
    %c0_6 = arith.constant 0 : index
    %c0_7 = arith.constant 0 : index
    %8 = vector.load %arg7[%c0_6, %c0_7] : memref<128x128xf32, #tpu.memory_space<vmem>>, vector<128x128xf32>
    tpu.vector_store %arg7[%c0_6, %c0_7], %7 {strides = array<i32>} : memref<128x128xf32, #tpu.memory_space<vmem>>, vector<128x128xf32>,
    %c0_i32_8 = arith.constant 0 : i32
    %9 = arith.cmpi eq, %arg1, %c0_i32_8 : i32
    %10 = arith.extui %9 : i1 to i32
    %c0_i32_9 = arith.constant 0 : i32
    %11 = arith.cmpi ne, %10, %c0_i32_9 : i32
    scf.if %11 {
      %c0_10 = arith.constant 0 : index
      %c0_11 = arith.constant 0 : index
      %12 = vector.load %arg7[%c0_10, %c0_11] : memref<128x128xf32, #tpu.memory_space<vmem>>, vector<128x128xf32>
      %c0_12 = arith.constant 0 : index
      %c0_13 = arith.constant 0 : index
      %13 = vector.load %arg4[%c0_12, %c0_13] : memref<128x128xf32, #tpu.memory_space<vmem>>, vector<128x128xf32>
      %14 = arith.addf %12, %13 : vector<128x128xf32>
      %c0_14 = arith.constant 0 : index
      %c0_15 = arith.constant 0 : index
      %15 = vector.load %arg5[%c0_14, %c0_15] : memref<1x128xf32, #tpu.memory_space<vmem>>, vector<1x128xf32>
      %16 = vector.broadcast %15 : vector<1x128xf32> to vector<128x128xf32>
      %17 = arith.addf %14, %16 : vector<128x128xf32>
      %c0_16 = arith.constant 0 : index
      %c0_17 = arith.constant 0 : index
      %18 = vector.load %arg6[%c0_16, %c0_17] : memref<128x128xf32, #tpu.memory_space<vmem>>, vector<128x128xf32>
      tpu.vector_store %arg6[%c0_16, %c0_17], %17 {strides = array<i32>} : memref<128x128xf32, #tpu.memory_space<vmem>>, vector<128x128xf32>,
    } else {
    }
    return
  }
  func.func @transform_0(%arg0: i32, %arg1: i32) -> (i32, i32) {
    %c0_i32 = arith.constant 0 : i32
    return %arg0, %arg1 : i32, i32
  }
  func.func @transform_1(%arg0: i32, %arg1: i32) -> (i32, i32) {
    %c0_i32 = arith.constant 0 : i32
    %c0_i32_0 = arith.constant 0 : i32
    return %arg1, %c0_i32 : i32, i32
  }
  func.func @transform_2(%arg0: i32, %arg1: i32) -> (i32, i32) {
    %c1_i32 = arith.constant 1 : i32
    %c0_i32 = arith.constant 0 : i32
    return %arg0, %c1_i32 : i32, i32
  }
  func.func @transform_3(%arg0: i32, %arg1: i32) -> (i32, i32) {
    %c0_i32 = arith.constant 0 : i32
    %c0_i32_0 = arith.constant 0 : i32
    %c0_i32_1 = arith.constant 0 : i32
    return %c0_i32, %c0_i32_0 : i32, i32
  }
  func.func @transform_4(%arg0: i32, %arg1: i32) -> (i32, i32) {
    %c0_i32 = arith.constant 0 : i32
    %c0_i32_0 = arith.constant 0 : i32
    return %arg0, %c0_i32 : i32, i32
  }
}

module attributes {stable_mosaic.version = 11 : i64} {
  func.func @_proj_kernel(%arg0: i32, %arg1: memref<128x16xf32, #tpu.memory_space<vmem>>, %arg2: memref<16x256xf32, #tpu.memory_space<vmem>>, %arg3: memref<128x256xf32, #tpu.memory_space<vmem>>) attributes {dimension_semantics = [#tpu.dimension_semantics<parallel>], iteration_bounds = array<i64: 1>, scalar_prefetch = 0 : i64, scratch_operands = 0 : i64, tpu.core_type = #tpu.core_type<tc>, window_params = [{transform_indices = @transform_0, window_bounds = array<i64: 128, 16>}, {pipeline_mode = #tpu.pipeline_mode<synchronous>, transform_indices = @transform_1, window_bounds = array<i64: 16, 256>}, {transform_indices = @transform_2, window_bounds = array<i64: 128, 256>}]} {
    %c0 = arith.constant 0 : index
    %c0_0 = arith.constant 0 : index
    %0 = vector.load %arg1[%c0, %c0_0] : memref<128x16xf32, #tpu.memory_space<vmem>>, vector<128x16xf32>
    %c0_1 = arith.constant 0 : index
    %c0_2 = arith.constant 0 : index
    %1 = vector.load %arg2[%c0_1, %c0_2] : memref<16x256xf32, #tpu.memory_space<vmem>>, vector<16x256xf32>
    %cst = arith.constant dense<0.000000e+00> : vector<128x256xf32>
    %2 = tpu.matmul %0, %1, %cst {dimension_numbers = #tpu.dot_dimension_numbers<[1], [0], [0], [1], [0, 0, 1, 1], [], []>} : vector<128x16xf32>, vector<16x256xf32>, vector<128x256xf32> -> vector<128x256xf32>
    %c0_3 = arith.constant 0 : index
    %c0_4 = arith.constant 0 : index
    %3 = vector.load %arg3[%c0_3, %c0_4] : memref<128x256xf32, #tpu.memory_space<vmem>>, vector<128x256xf32>
    tpu.vector_store %arg3[%c0_3, %c0_4], %2 {strides = array<i32>} : memref<128x256xf32, #tpu.memory_space<vmem>>, vector<128x256xf32>,
    return
  }
  func.func @transform_0(%arg0: i32) -> (i32, i32) {
    %c0_i32 = arith.constant 0 : i32
    %c0_i32_0 = arith.constant 0 : i32
    return %arg0, %c0_i32 : i32, i32
  }
  func.func @transform_1(%arg0: i32) -> (i32, i32) {
    %c0_i32 = arith.constant 0 : i32
    %c0_i32_0 = arith.constant 0 : i32
    %c0_i32_1 = arith.constant 0 : i32
    return %c0_i32, %c0_i32_0 : i32, i32
  }
  func.func @transform_2(%arg0: i32) -> (i32, i32) {
    %c0_i32 = arith.constant 0 : i32
    %c0_i32_0 = arith.constant 0 : i32
    return %arg0, %c0_i32 : i32, i32
  }
}

</mosaic_0001>

<bundles_post_ra>
// kernel: gconv_forward.3
= control target key start
LH: loop header
LB: loop body
LE: loop exit
PB: predicated region body
PF: predicated region fallthrough
CT: control target
= control target key end

     0   :  { %s930_s0 = inlined_call_operand.vmem [shape: f32[128,128], index: 0, kind: input, shape index: {}]   ;;  %s931_s1 = inlined_call_operand.vmem [shape: f32[128,256], index: 1, kind: input, shape index: {}, may-alias: {1,2}]   ;;  %s932_s2 = inlined_call_operand.vmem [shape: f32[128,256], index: 2, kind: input, shape index: {}, may-alias: {1,2}]   ;;  %s933_s3 = inlined_call_operand.vmem [shape: f32[1,128], index: 3, kind: input, shape index: {}]   ;;  %s934_s4 = inlined_call_operand.vmem [shape: f32[128,128], index: 4, kind: output, shape index: {}]  }
   0x1   :  { %v101_v0 = vld [vmem:[%s931_s1 + $0xf0] sm:$0xff]  ;;  %v99_v1 = vld [vmem:[%s931_s1 + $0xe0] sm:$0xff]  ;;  %v245_v18 = vld [vmem:[%s930_s0 + $0x8] sm:$0xff] }
   0x2   :  { %604 = vmatprep.subr.mxu0 %v101_v0  ;;  %660 = vmatprep.subr.mxu1 %v101_v0  ;;  %v97_v2 = vld [vmem:[%s931_s1 + $0xd0] sm:$0xff]  ;;  %v95_v3 = vld [vmem:[%s931_s1 + $0xc0] sm:$0xff]  ;;  %v253_v19 = vld [vmem:[%s930_s0 + $0x48] sm:$0xff] }
   0x3   :  { %605 = vmatpush3.msra.mxu0 %v101_v0  ;;  %676 = vmatpush3.msra.mxu1 %v101_v0  ;;  %v93_v4 = vld [vmem:[%s931_s1 + $0xb0] sm:$0xff]  ;;  %v91_v5 = vld [vmem:[%s931_s1 + $0xa0] sm:$0xff]  ;;  %v247_v22 = vld [vmem:[%s930_s0 + $0x18] sm:$0xff] }
   0x4   :  { %606 = vmatprep.subr.mxu0 %v99_v1  ;;  %661 = vmatprep.subr.mxu1 %v99_v1  ;;  %v89_v6 = vld [vmem:[%s931_s1 + $0x90] sm:$0xff]  ;;  %v87_v7 = vld [vmem:[%s931_s1 + $0x80] sm:$0xff]  ;;  %v255_v23 = vld [vmem:[%s930_s0 + $0x58] sm:$0xff] }
   0x5   :  { %607 = vmatpush3.msra.mxu0 %v99_v1  ;;  %677 = vmatpush3.msra.mxu1 %v99_v1  ;;  %v85_v8 = vld [vmem:[%s931_s1 + $0x70] sm:$0xff]  ;;  %v83_v9 = vld [vmem:[%s931_s1 + $0x60] sm:$0xff]  ;;  %v249_v26 = vld [vmem:[%s930_s0 + $0x28] sm:$0xff] }
   0x6   :  { %608 = vmatprep.subr.mxu0 %v97_v2  ;;  %662 = vmatprep.subr.mxu1 %v97_v2  ;;  %v81_v10 = vld [vmem:[%s931_s1 + $0x50] sm:$0xff]  ;;  %v79_v11 = vld [vmem:[%s931_s1 + $0x40] sm:$0xff]  ;;  %v257_v27 = vld [vmem:[%s930_s0 + $0x68] sm:$0xff] }
   0x7   :  { %609 = vmatpush3.msra.mxu0 %v97_v2  ;;  %678 = vmatpush3.msra.mxu1 %v97_v2  ;;  %v77_v12 = vld [vmem:[%s931_s1 + $0x30] sm:$0xff]  ;;  %v75_v13 = vld [vmem:[%s931_s1 + $0x20] sm:$0xff]  ;;  %v251_v30 = vld [vmem:[%s930_s0 + $0x38] sm:$0xff] }
   0x8   :  { %610 = vmatprep.subr.mxu0 %v95_v3  ;;  %663 = vmatprep.subr.mxu1 %v95_v3  ;;  %v73_v14 = vld [vmem:[%s931_s1 + $0x10] sm:$0xff]  ;;  %v71_v15 = vld [vmem:[%s931_s1] sm:$0xff]  ;;  %v259_v31 = vld [vmem:[%s930_s0 + $0x78] sm:$0xff] }
   0x9   :  { %611 = vmatpush3.msra.mxu0 %v95_v3  ;;  %679 = vmatpush3.msra.mxu1 %v95_v3  ;;  %v244_v16 = vld [vmem:[%s930_s0] sm:$0xff]  ;;  %v246_v20 = vld [vmem:[%s930_s0 + $0x10] sm:$0xff]  ;;  %v556_v32 = vld [vmem:[%s932_s2 + $0x18] sm:$0xff] }
   0xa   :  { %612 = vmatprep.subr.mxu0 %v93_v4  ;;  %664 = vmatprep.subr.mxu1 %v93_v4  ;;  %v252_v17 = vld [vmem:[%s930_s0 + $0x40] sm:$0xff]  ;;  %v254_v21 = vld [vmem:[%s930_s0 + $0x50] sm:$0xff]  ;;  %v564_v33 = vld [vmem:[%s932_s2 + $0x98] sm:$0xff] }
   0xb   :  { %613 = vmatpush3.msra.mxu0 %v93_v4  ;;  %680 = vmatpush3.msra.mxu1 %v93_v4  ;;  %v248_v24 = vld [vmem:[%s930_s0 + $0x20] sm:$0xff]  ;;  %v250_v28 = vld [vmem:[%s930_s0 + $0x30] sm:$0xff]  ;;  %v555_v37 = vld [vmem:[%s932_s2 + $0x8] sm:$0xff] }
   0xc   :  { %614 = vmatprep.subr.mxu0 %v91_v5  ;;  %665 = vmatprep.subr.mxu1 %v91_v5  ;;  %v256_v25 = vld [vmem:[%s930_s0 + $0x60] sm:$0xff]  ;;  %v258_v29 = vld [vmem:[%s930_s0 + $0x70] sm:$0xff]  ;;  %v563_v38 = vld [vmem:[%s932_s2 + $0x88] sm:$0xff] }
   0xd   :  { %615 = vmatpush3.msra.mxu0 %v91_v5  ;;  %681 = vmatpush3.msra.mxu1 %v91_v5  ;;  %v822_v35 = vld [vmem:[%s933_s3] ss:$0 sm:$0xff]  ;;  %v558_v43 = vld [vmem:[%s932_s2 + $0x38] sm:$0xff]  ;;  %v557_v51 = vld [vmem:[%s932_s2 + $0x28] sm:$0xff] }
   0xe   :  { %616 = vmatprep.subr.mxu0 %v89_v6  ;;  %666 = vmatprep.subr.mxu1 %v89_v6  ;;  %v566_v44 = vld [vmem:[%s932_s2 + $0xb8] sm:$0xff]  ;;  %v565_v52 = vld [vmem:[%s932_s2 + $0xa8] sm:$0xff] }
   0xf   :  { %617 = vmatpush3.msra.mxu0 %v89_v6  ;;  %682 = vmatpush3.msra.mxu1 %v89_v6  ;;  %v560_v59 = vld [vmem:[%s932_s2 + $0x58] sm:$0xff]  ;;  %v559_v3 = vld [vmem:[%s932_s2 + $0x48] sm:$0xff] }
  0x10   :  { %618 = vmatprep.subr.mxu0 %v87_v7  ;;  %667 = vmatprep.subr.mxu1 %v87_v7  ;;  %v568_v60 = vld [vmem:[%s932_s2 + $0xd8] sm:$0xff]  ;;  %v567_v4 = vld [vmem:[%s932_s2 + $0xc8] sm:$0xff] }
  0x11   :  { %619 = vmatpush3.msra.mxu0 %v87_v7  ;;  %683 = vmatpush3.msra.mxu1 %v87_v7 }
  0x12   :  { %620 = vmatprep.subr.mxu0 %v85_v8  ;;  %668 = vmatprep.subr.mxu1 %v85_v8 }
  0x13   :  { %621 = vmatpush3.msra.mxu0 %v85_v8  ;;  %684 = vmatpush3.msra.mxu1 %v85_v8 }
  0x14   :  { %622 = vmatprep.subr.mxu0 %v83_v9  ;;  %669 = vmatprep.subr.mxu1 %v83_v9 }
  0x15   :  { %623 = vmatpush3.msra.mxu0 %v83_v9  ;;  %685 = vmatpush3.msra.mxu1 %v83_v9 }
  0x16   :  { %624 = vmatprep.subr.mxu0 %v81_v10  ;;  %670 = vmatprep.subr.mxu1 %v81_v10 }
  0x17   :  { %625 = vmatpush3.msra.mxu0 %v81_v10  ;;  %686 = vmatpush3.msra.mxu1 %v81_v10 }
  0x18   :  { %626 = vmatprep.subr.mxu0 %v79_v11  ;;  %671 = vmatprep.subr.mxu1 %v79_v11 }
  0x19   :  { %627 = vmatpush3.msra.mxu0 %v79_v11  ;;  %687 = vmatpush3.msra.mxu1 %v79_v11  ;;  %v562_v11 = vld [vmem:[%s932_s2 + $0x78] sm:$0xff] }
  0x1a   :  { %628 = vmatprep.subr.mxu0 %v77_v12  ;;  %672 = vmatprep.subr.mxu1 %v77_v12 }
  0x1b   :  { %629 = vmatpush3.msra.mxu0 %v77_v12  ;;  %688 = vmatpush3.msra.mxu1 %v77_v12  ;;  %v570_v12 = vld [vmem:[%s932_s2 + $0xf8] sm:$0xff] }
  0x1c   :  { %630 = vmatprep.subr.mxu0 %v75_v13  ;;  %673 = vmatprep.subr.mxu1 %v75_v13 }
  0x1d   :  { %631 = vmatpush3.msra.mxu0 %v75_v13  ;;  %689 = vmatpush3.msra.mxu1 %v75_v13 }
  0x1e   :  { %632 = vmatprep.subr.mxu0 %v73_v14  ;;  %674 = vmatprep.subr.mxu1 %v73_v14 }
  0x1f   :  { %633 = vmatpush3.msra.mxu0 %v73_v14  ;;  %690 = vmatpush3.msra.mxu1 %v73_v14 }
  0x20   :  { %634 = vmatprep.subr.mxu0 %v71_v15  ;;  %675 = vmatprep.subr.mxu1 %v71_v15 }
  0x21   :  { %635 = vmatpush3.msra.mxu0 %v71_v15  ;;  %691 = vmatpush3.msra.mxu1 %v71_v15 }
  0x22   :  { %636 = vmatprep.mubr.f32.mxu0 %v244_v16  ;;  %648 = vmatprep.mubr.f32.mxu1 %v252_v17 }
  0x23   :  { %637 = vmatmul.mubr.f32.vlgmr.msra.gmra.mxu0 %v245_v18  ;;  %649 = vmatmul.mubr.f32.vlgmr.msra.gmra.mxu1 %v253_v19  ;;  %v561_v19 = vld [vmem:[%s932_s2 + $0x68] sm:$0xff] }
  0x24   :  { %639 = vmatprep.mubr.f32.mxu0 %v246_v20  ;;  %651 = vmatprep.mubr.f32.mxu1 %v254_v21  ;;  %v569_v20 = vld [vmem:[%s932_s2 + $0xe8] sm:$0xff] }
  0x27   :  { %640 = vmatmul.mubr.f32.gmra.mxu0 %v247_v22  ;;  %652 = vmatmul.mubr.f32.gmra.mxu1 %v255_v23 }
  0x28   :  { %642 = vmatprep.mubr.f32.mxu0 %v248_v24  ;;  %654 = vmatprep.mubr.f32.mxu1 %v256_v25 }
  0x2b   :  { %643 = vmatmul.mubr.f32.gmra.mxu0 %v249_v26  ;;  %655 = vmatmul.mubr.f32.gmra.mxu1 %v257_v27 }
  0x2c   :  { %645 = vmatprep.mubr.f32.mxu0 %v250_v28  ;;  %657 = vmatprep.mubr.f32.mxu1 %v258_v29 }
  0x2f   :  { %646 = vmatmul.mubr.f32.gmra.mxu0 %v251_v30  ;;  %658 = vmatmul.mubr.f32.gmra.mxu1 %v259_v31 }
  0xe3   :  { %v638_v34 = vpop.f32.mrf.mxu0  ;;  %v650_v36 = vpop.f32.mrf.mxu1 }
  0xe4   :  { %v489_v39 = vadd.f32 %v638_v34, %v556_v32  ;;  %v497_v40 = vadd.f32 %v650_v36, %v564_v33 }
  0xe5   :  { %v342_v41 = vpop.f32.mrf.mxu0  ;;  %v382_v42 = vpop.f32.mrf.mxu1 }
  0xe6   :  { %v512_v45 = vadd.f32 %v822_v35, %v489_v39  ;;  %v520_v46 = vadd.f32 %v822_v35, %v497_v40  ;;  %v488_v47 = vadd.f32 %v555_v37, %v342_v41  ;;  %v496_v48 = vadd.f32 %v563_v38, %v382_v42 }
  0xe7   :  { %v641_v49 = vpop.f32.mrf.mxu0  ;;  %v653_v50 = vpop.f32.mrf.mxu1 }
  0xe8   :  { %528 = vst [vmem:[%s934_s4 + $0x8] sm:$0xff] %v512_v45  ;;  %536 = vst [vmem:[%s934_s4 + $0x48] sm:$0xff] %v520_v46  ;;  %v511_v53 = vadd.f32 %v822_v35, %v488_v47  ;;  %v519_v54 = vadd.f32 %v822_v35, %v496_v48  ;;  %v491_v55 = vadd.f32 %v641_v49, %v558_v43 }
  0xe9   :  { %v499_v56 = vadd.f32 %v653_v50, %v566_v44  ;;  %v352_v57 = vpop.f32.mrf.mxu0  ;;  %v392_v58 = vpop.f32.mrf.mxu1 }
  0xea   :  { %527 = vst [vmem:[%s934_s4] sm:$0xff] %v511_v53  ;;  %535 = vst [vmem:[%s934_s4 + $0x40] sm:$0xff] %v519_v54  ;;  %v514_v61 = vadd.f32 %v822_v35, %v491_v55  ;;  %v490_v63 = vadd.f32 %v557_v51, %v352_v57  ;;  %v498_v0 = vadd.f32 %v565_v52, %v392_v58 }
  0xeb   :  { %v522_v62 = vadd.f32 %v822_v35, %v499_v56  ;;  %v644_v1 = vpop.f32.mrf.mxu0  ;;  %v656_v2 = vpop.f32.mrf.mxu1 }
  0xec   :  { %530 = vst [vmem:[%s934_s4 + $0x18] sm:$0xff] %v514_v61  ;;  %v513_v5 = vadd.f32 %v822_v35, %v490_v63  ;;  %v521_v6 = vadd.f32 %v822_v35, %v498_v0  ;;  %v493_v7 = vadd.f32 %v644_v1, %v560_v59  ;;  %v501_v8 = vadd.f32 %v656_v2, %v568_v60 }
  0xed   :  { %538 = vst [vmem:[%s934_s4 + $0x58] sm:$0xff] %v522_v62  ;;  %v362_v9 = vpop.f32.mrf.mxu0  ;;  %v402_v10 = vpop.f32.mrf.mxu1 }
  0xee   :  { %529 = vst [vmem:[%s934_s4 + $0x10] sm:$0xff] %v513_v5  ;;  %537 = vst [vmem:[%s934_s4 + $0x50] sm:$0xff] %v521_v6  ;;  %v516_v13 = vadd.f32 %v822_v35, %v493_v7  ;;  %v524_v14 = vadd.f32 %v822_v35, %v501_v8  ;;  %v492_v15 = vadd.f32 %v559_v3, %v362_v9 }
  0xef   :  { %v500_v16 = vadd.f32 %v567_v4, %v402_v10  ;;  %v647_v17 = vpop.f32.mrf.mxu0  ;;  %v659_v18 = vpop.f32.mrf.mxu1 }
  0xf0   :  { %532 = vst [vmem:[%s934_s4 + $0x28] sm:$0xff] %v516_v13  ;;  %540 = vst [vmem:[%s934_s4 + $0x68] sm:$0xff] %v524_v14  ;;  %v515_v21 = vadd.f32 %v822_v35, %v492_v15  ;;  %v495_v23 = vadd.f32 %v647_v17, %v562_v11  ;;  %v503_v24 = vadd.f32 %v659_v18, %v570_v12 }
  0xf1   :  { %v523_v22 = vadd.f32 %v822_v35, %v500_v16  ;;  %v372_v25 = vpop.f32.mrf.mxu0  ;;  %v412_v26 = vpop.f32.mrf.mxu1 }
  0xf2   :  { %531 = vst [vmem:[%s934_s4 + $0x20] sm:$0xff] %v515_v21  ;;  %v518_v27 = vadd.f32 %v822_v35, %v495_v23  ;;  %v526_v28 = vadd.f32 %v822_v35, %v503_v24  ;;  %v494_v29 = vadd.f32 %v561_v19, %v372_v25  ;;  %v502_v30 = vadd.f32 %v569_v20, %v412_v26 }
  0xf3   :  { %539 = vst [vmem:[%s934_s4 + $0x60] sm:$0xff] %v523_v22 }
  0xf4   :  { %534 = vst [vmem:[%s934_s4 + $0x38] sm:$0xff] %v518_v27  ;;  %542 = vst [vmem:[%s934_s4 + $0x78] sm:$0xff] %v526_v28  ;;  %v517_v31 = vadd.f32 %v822_v35, %v494_v29  ;;  %v525_v32 = vadd.f32 %v822_v35, %v502_v30 }
  0xf6   :  { %533 = vst [vmem:[%s934_s4 + $0x30] sm:$0xff] %v517_v31  ;;  %541 = vst [vmem:[%s934_s4 + $0x70] sm:$0xff] %v525_v32 }

// kernel: gconv_forward.2
= control target key start
LH: loop header
LB: loop body
LE: loop exit
PB: predicated region body
PF: predicated region fallthrough
CT: control target
= control target key end

     0   :  { %v298_v3 = vmov 0.0   ;;  %vm31_vm0 = vcmask 130048   ;;  %s486_s1 = inlined_call_operand.vmem [shape: f32[16,256], index: 1, kind: input, shape index: {}]   ;;  %s487_s0 = inlined_call_operand.vmem [shape: f32[128,16], index: 0, kind: input, shape index: {}]   ;;  %s488_s2 = inlined_call_operand.vmem [shape: f32[128,256], index: 2, kind: output, shape index: {}]  }
   0x1   :  { %v30_v0 = vld [vmem:[%s486_s1 + $0x18] sm:$0xff]  ;;  %v29_v1 = vld [vmem:[%s486_s1 + $0x10] sm:$0xff]  ;;  %v28_v2 = vld [vmem:[%s486_s1 + $0x8] sm:$0xff]  ;;  %144 = vmatprep.mubr.f32.mxu0 %v298_v3  ;;  %192 = vmatprep.mubr.f32.mxu1 %v298_v3 }
   0x2   :  { %108 = vmatprep.subr.mxu0 %v30_v0  ;;  %293 = vmatprep.subr.mxu1 %v30_v0  ;;  %v27_v4 = vld [vmem:[%s486_s1] sm:$0xff]  ;;  %v12_v7 = vld [vmem:[%s487_s0 + $0x8] sm:$0xff]  ;;  %v13_v9 = vld [vmem:[%s487_s0 + $0x10] sm:$0xff] }
   0x3   :  { %109 = vmatpush1.msra.mxu0 %v29_v1  ;;  %295 = vmatpush1.msra.mxu1 %v29_v1  ;;  %v11_v5 = vld [vmem:[%s487_s0] sm:$0xff]  ;;  %v20_v8 = vld [vmem:[%s487_s0 + $0x48] sm:$0xff]  ;;  %v21_v10 = vld [vmem:[%s487_s0 + $0x50] sm:$0xff] }
   0x4   :  { %v19_v6 = vld [vmem:[%s487_s0 + $0x40] sm:$0xff]  ;;  %110 = vmatprep.subr.mxu0 %v28_v2  ;;  %294 = vmatprep.subr.mxu1 %v28_v2  ;;  %v14_v11 = vld [vmem:[%s487_s0 + $0x18] sm:$0xff]  ;;  %v16_v15 = vld [vmem:[%s487_s0 + $0x28] sm:$0xff] }
   0x5   :  { %111 = vmatpush1.msra.mxu0 %v27_v4  ;;  %296 = vmatpush1.msra.mxu1 %v27_v4  ;;  %v22_v12 = vld [vmem:[%s487_s0 + $0x58] sm:$0xff]  ;;  %v15_v13 = vld [vmem:[%s487_s0 + $0x20] sm:$0xff]  ;;  %v24_v16 = vld [vmem:[%s487_s0 + $0x68] sm:$0xff] }
   0x6   :  { %277 = vmatmul.mubr.msk.f32.vlgmr.msra.gmra.mxu0 %vm31_vm0, %v11_v5  ;;  %285 = vmatmul.mubr.msk.f32.vlgmr.msra.gmra.mxu1 %vm31_vm0, %v19_v6  ;;  %v23_v14 = vld [vmem:[%s487_s0 + $0x60] sm:$0xff]  ;;  %v17_v17 = vld [vmem:[%s487_s0 + $0x30] sm:$0xff]  ;;  %v18_v19 = vld [vmem:[%s487_s0 + $0x38] sm:$0xff] }
   0x7   :  { %150 = vmatprep.mubr.f32.mxu0 %v298_v3  ;;  %198 = vmatprep.mubr.f32.mxu1 %v298_v3  ;;  %v25_v18 = vld [vmem:[%s487_s0 + $0x70] sm:$0xff]  ;;  %v26_v20 = vld [vmem:[%s487_s0 + $0x78] sm:$0xff] }
   0xa   :  { %278 = vmatmul.mubr.msk.f32.gmra.mxu0 %vm31_vm0, %v12_v7  ;;  %286 = vmatmul.mubr.msk.f32.gmra.mxu1 %vm31_vm0, %v20_v8 }
   0xb   :  { %156 = vmatprep.mubr.f32.mxu0 %v298_v3  ;;  %204 = vmatprep.mubr.f32.mxu1 %v298_v3 }
   0xe   :  { %279 = vmatmul.mubr.msk.f32.gmra.mxu0 %vm31_vm0, %v13_v9  ;;  %287 = vmatmul.mubr.msk.f32.gmra.mxu1 %vm31_vm0, %v21_v10 }
   0xf   :  { %162 = vmatprep.mubr.f32.mxu0 %v298_v3  ;;  %210 = vmatprep.mubr.f32.mxu1 %v298_v3 }
  0x12   :  { %280 = vmatmul.mubr.msk.f32.gmra.mxu0 %vm31_vm0, %v14_v11  ;;  %288 = vmatmul.mubr.msk.f32.gmra.mxu1 %vm31_vm0, %v22_v12 }
  0x13   :  { %168 = vmatprep.mubr.f32.mxu0 %v298_v3  ;;  %216 = vmatprep.mubr.f32.mxu1 %v298_v3 }
  0x16   :  { %281 = vmatmul.mubr.msk.f32.gmra.mxu0 %vm31_vm0, %v15_v13  ;;  %289 = vmatmul.mubr.msk.f32.gmra.mxu1 %vm31_vm0, %v23_v14 }
  0x17   :  { %174 = vmatprep.mubr.f32.mxu0 %v298_v3  ;;  %222 = vmatprep.mubr.f32.mxu1 %v298_v3 }
  0x1a   :  { %282 = vmatmul.mubr.msk.f32.gmra.mxu0 %vm31_vm0, %v16_v15  ;;  %290 = vmatmul.mubr.msk.f32.gmra.mxu1 %vm31_vm0, %v24_v16 }
  0x1b   :  { %180 = vmatprep.mubr.f32.mxu0 %v298_v3  ;;  %228 = vmatprep.mubr.f32.mxu1 %v298_v3 }
  0x1e   :  { %283 = vmatmul.mubr.msk.f32.gmra.mxu0 %vm31_vm0, %v17_v17  ;;  %291 = vmatmul.mubr.msk.f32.gmra.mxu1 %vm31_vm0, %v25_v18 }
  0x1f   :  { %186 = vmatprep.mubr.f32.mxu0 %v298_v3  ;;  %234 = vmatprep.mubr.f32.mxu1 %v298_v3 }
  0x22   :  { %284 = vmatmul.mubr.msk.f32.gmra.mxu0 %vm31_vm0, %v18_v19  ;;  %292 = vmatmul.mubr.msk.f32.gmra.mxu1 %vm31_vm0, %v26_v20 }
  0xc6   :  { %v146_v21 = vpop.f32.mrf.mxu0  ;;  %v194_v22 = vpop.f32.mrf.mxu1 }
  0xc7   :  { %241 = vst [vmem:[%s488_s2] sm:$0xff] %v146_v21  ;;  %257 = vst [vmem:[%s488_s2 + $0x80] sm:$0xff] %v194_v22 }
  0xc8   :  { %v148_v23 = vpop.f32.mrf.mxu0  ;;  %v196_v24 = vpop.f32.mrf.mxu1 }
  0xc9   :  { %242 = vst [vmem:[%s488_s2 + $0x8] sm:$0xff] %v148_v23  ;;  %258 = vst [vmem:[%s488_s2 + $0x88] sm:$0xff] %v196_v24 }
  0xca   :  { %v152_v25 = vpop.f32.mrf.mxu0  ;;  %v200_v26 = vpop.f32.mrf.mxu1 }
  0xcb   :  { %243 = vst [vmem:[%s488_s2 + $0x10] sm:$0xff] %v152_v25  ;;  %259 = vst [vmem:[%s488_s2 + $0x90] sm:$0xff] %v200_v26 }
  0xcc   :  { %v154_v27 = vpop.f32.mrf.mxu0  ;;  %v202_v28 = vpop.f32.mrf.mxu1 }
  0xcd   :  { %244 = vst [vmem:[%s488_s2 + $0x18] sm:$0xff] %v154_v27  ;;  %260 = vst [vmem:[%s488_s2 + $0x98] sm:$0xff] %v202_v28 }
  0xce   :  { %v158_v29 = vpop.f32.mrf.mxu0  ;;  %v206_v30 = vpop.f32.mrf.mxu1 }
  0xcf   :  { %245 = vst [vmem:[%s488_s2 + $0x20] sm:$0xff] %v158_v29  ;;  %261 = vst [vmem:[%s488_s2 + $0xa0] sm:$0xff] %v206_v30 }
  0xd0   :  { %v160_v31 = vpop.f32.mrf.mxu0  ;;  %v208_v32 = vpop.f32.mrf.mxu1 }
  0xd1   :  { %246 = vst [vmem:[%s488_s2 + $0x28] sm:$0xff] %v160_v31  ;;  %262 = vst [vmem:[%s488_s2 + $0xa8] sm:$0xff] %v208_v32 }
  0xd2   :  { %v164_v33 = vpop.f32.mrf.mxu0  ;;  %v212_v34 = vpop.f32.mrf.mxu1 }
  0xd3   :  { %247 = vst [vmem:[%s488_s2 + $0x30] sm:$0xff] %v164_v33  ;;  %263 = vst [vmem:[%s488_s2 + $0xb0] sm:$0xff] %v212_v34 }
  0xd4   :  { %v166_v35 = vpop.f32.mrf.mxu0  ;;  %v214_v36 = vpop.f32.mrf.mxu1 }
  0xd5   :  { %248 = vst [vmem:[%s488_s2 + $0x38] sm:$0xff] %v166_v35  ;;  %264 = vst [vmem:[%s488_s2 + $0xb8] sm:$0xff] %v214_v36 }
  0xd6   :  { %v170_v37 = vpop.f32.mrf.mxu0  ;;  %v218_v38 = vpop.f32.mrf.mxu1 }
  0xd7   :  { %249 = vst [vmem:[%s488_s2 + $0x40] sm:$0xff] %v170_v37  ;;  %265 = vst [vmem:[%s488_s2 + $0xc0] sm:$0xff] %v218_v38 }
  0xd8   :  { %v172_v39 = vpop.f32.mrf.mxu0  ;;  %v220_v40 = vpop.f32.mrf.mxu1 }
  0xd9   :  { %250 = vst [vmem:[%s488_s2 + $0x48] sm:$0xff] %v172_v39  ;;  %266 = vst [vmem:[%s488_s2 + $0xc8] sm:$0xff] %v220_v40 }
  0xda   :  { %v176_v41 = vpop.f32.mrf.mxu0  ;;  %v224_v42 = vpop.f32.mrf.mxu1 }
  0xdb   :  { %251 = vst [vmem:[%s488_s2 + $0x50] sm:$0xff] %v176_v41  ;;  %267 = vst [vmem:[%s488_s2 + $0xd0] sm:$0xff] %v224_v42 }
  0xdc   :  { %v178_v43 = vpop.f32.mrf.mxu0  ;;  %v226_v44 = vpop.f32.mrf.mxu1 }
  0xdd   :  { %252 = vst [vmem:[%s488_s2 + $0x58] sm:$0xff] %v178_v43  ;;  %268 = vst [vmem:[%s488_s2 + $0xd8] sm:$0xff] %v226_v44 }
  0xde   :  { %v182_v45 = vpop.f32.mrf.mxu0  ;;  %v230_v46 = vpop.f32.mrf.mxu1 }
  0xdf   :  { %253 = vst [vmem:[%s488_s2 + $0x60] sm:$0xff] %v182_v45  ;;  %269 = vst [vmem:[%s488_s2 + $0xe0] sm:$0xff] %v230_v46 }
  0xe0   :  { %v184_v47 = vpop.f32.mrf.mxu0  ;;  %v232_v48 = vpop.f32.mrf.mxu1 }
  0xe1   :  { %254 = vst [vmem:[%s488_s2 + $0x68] sm:$0xff] %v184_v47  ;;  %270 = vst [vmem:[%s488_s2 + $0xe8] sm:$0xff] %v232_v48 }
  0xe2   :  { %v188_v49 = vpop.f32.mrf.mxu0  ;;  %v236_v50 = vpop.f32.mrf.mxu1 }
  0xe3   :  { %255 = vst [vmem:[%s488_s2 + $0x70] sm:$0xff] %v188_v49  ;;  %271 = vst [vmem:[%s488_s2 + $0xf0] sm:$0xff] %v236_v50 }
  0xe4   :  { %v190_v51 = vpop.f32.mrf.mxu0  ;;  %v238_v52 = vpop.f32.mrf.mxu1 }
  0xe5   :  { %256 = vst [vmem:[%s488_s2 + $0x78] sm:$0xff] %v190_v51  ;;  %272 = vst [vmem:[%s488_s2 + $0xf8] sm:$0xff] %v238_v52 }

</bundles_post_ra>
